<compile_context>
chip_gen: v7x
topology: tpu7x:2x2x1
jax: 0.10.0
libtpu: 0.0.40
codegen_flags: <defaults>
</compile_context>

<pallas_src>
import jax
import jax.numpy as jnp
from jax import lax
from jax.experimental import pallas as pl
from jax.experimental.pallas import tpu as pltpu

# Small synthetic sizes (consistent with the pass-through forward signature).
B = 8     # batch
D = 128   # input feature dim (both modalities)
H = 128   # hidden dim
E = 128   # embedding dim

_NORM_EPS = 1e-12   # torch.nn.functional.normalize default eps


def _tower(x_f32, w1_bf16, b1_f32, w2_bf16, b2_f32):
    """Linear -> GELU -> Linear -> L2 normalize.

    Matmuls run in bf16 on the MXU with f32 accumulation; all elementwise math
    (bias, GELU, rsqrt-normalize) stays in f32 on the VPU/EUP.
    """
    h = lax.dot_general(
        x_f32.astype(jnp.bfloat16), w1_bf16,
        dimension_numbers=(((1,), (0,)), ((), ())),
        preferred_element_type=jnp.float32) + b1_f32
    # TODO(synk): PyTorch nn.GELU defaults to the exact erf form; the tanh
    # approximation is used here (erf has no guaranteed Mosaic lowering).
    h = jax.nn.gelu(h)
    z = lax.dot_general(
        h.astype(jnp.bfloat16), w2_bf16,
        dimension_numbers=(((1,), (0,)), ((), ())),
        preferred_element_type=jnp.float32) + b2_f32
    # F.normalize semantics: z / max(||z||, eps) == z * rsqrt(max(||z||^2, eps^2))
    ss = jnp.sum(z * z, axis=-1, keepdims=True)
    inv_norm = lax.rsqrt(jnp.maximum(ss, _NORM_EPS * _NORM_EPS))
    return z * inv_norm


def equiav_kernel(
    inv_t_ref,                                   # SMEM (2,): [1/t_a, 1/t_v]
    a_all_ref, v_all_ref,                        # VMEM [2B, D] f32 (clean ; aug)
    wa1_ref, ba1_ref, wa2_ref, ba2_ref,          # audio tower (weights bf16, biases f32)
    wv1_ref, bv1_ref, wv2_ref, bv2_ref,          # visual tower
    sim_ref, sim_aug_ref, za_ref, zv_ref,        # outputs
):
    # One tower pass per modality over the stacked [2B, D] inputs.
    z_a_all = _tower(a_all_ref[...], wa1_ref[...], ba1_ref[...],
                     wa2_ref[...], ba2_ref[...])
    z_v_all = _tower(v_all_ref[...], wv1_ref[...], bv1_ref[...],
                     wv2_ref[...], bv2_ref[...])

    z_a, z_a_aug = z_a_all[:B, :], z_a_all[B:, :]
    z_v, z_v_aug = z_v_all[:B, :], z_v_all[B:, :]

    inv_t_a = inv_t_ref[0]
    inv_t_v = inv_t_ref[1]

    # Contract the feature dim of both operands directly (transpose folded into
    # the matmul, no XLU vxpose / extra VMEM copy of z_v.T).
    dn = (((1,), (1,)), ((), ()))
    sim = lax.dot_general(z_a, z_v, dimension_numbers=dn,
                          preferred_element_type=jnp.float32) * inv_t_a
    sim_aug = lax.dot_general(z_a_aug, z_v_aug, dimension_numbers=dn,
                              preferred_element_type=jnp.float32) * inv_t_v

    # [B, B] stores are masked (last dim < 128 lanes) — negligible at B=8.
    sim_ref[...] = sim
    sim_aug_ref[...] = sim_aug
    za_ref[...] = z_a
    zv_ref[...] = z_v


def init_params(key):
    ks = jax.random.split(key, 8)
    s_in = 1.0 / jnp.sqrt(jnp.float32(D))
    s_h = 1.0 / jnp.sqrt(jnp.float32(H))
    return {
        "wa1": jax.random.normal(ks[0], (D, H), jnp.float32) * s_in,
        "ba1": jax.random.normal(ks[1], (1, H), jnp.float32) * 0.01,
        "wa2": jax.random.normal(ks[2], (H, E), jnp.float32) * s_h,
        "ba2": jax.random.normal(ks[3], (1, E), jnp.float32) * 0.01,
        "wv1": jax.random.normal(ks[4], (D, H), jnp.float32) * s_in,
        "bv1": jax.random.normal(ks[5], (1, H), jnp.float32) * 0.01,
        "wv2": jax.random.normal(ks[6], (H, E), jnp.float32) * s_h,
        "bv2": jax.random.normal(ks[7], (1, E), jnp.float32) * 0.01,
    }


def wrapped_model_forward(params, data_a, data_v, data_a_aug, data_v_aug,
                          t_a, t_v, label=None, t_a_list=None, t_v_list=None):
    """Equivalent of EquiAV.forward's embedding/similarity hot path.

    # TODO(synk): the inner `model` and the loss_inter/loss_intra modules are
    # loaded via importlib in the reference and are not in the provided source;
    # `label`, `t_a_list`, `t_v_list` are accepted (as in the wrapper) but unused.
    """
    # Stack clean + augmented inputs per modality -> single tower pass each.
    a_all = jnp.concatenate([data_a, data_a_aug], axis=0).astype(jnp.float32)
    v_all = jnp.concatenate([data_v, data_v_aug], axis=0).astype(jnp.float32)

    # Exact reciprocals computed once in the wrapper; both scalars packed into
    # one small 1-D SMEM array (no per-scalar (8,128)-word SMEM padding).
    inv_t = (1.0 / jnp.stack([jnp.asarray(t_a, jnp.float32),
                              jnp.asarray(t_v, jnp.float32)])).astype(jnp.float32)

    bf16 = jnp.bfloat16
    smem_spec = pl.BlockSpec(memory_space=pltpu.MemorySpace.SMEM)
    vmem_spec = pl.BlockSpec(memory_space=pltpu.MemorySpace.VMEM)

    out_shape = (
        jax.ShapeDtypeStruct((B, B), jnp.float32),  # sim_av      (z_a vs z_v)
        jax.ShapeDtypeStruct((B, B), jnp.float32),  # sim_av_aug  (z_a_aug vs z_v_aug)
        jax.ShapeDtypeStruct((B, E), jnp.float32),  # z_a
        jax.ShapeDtypeStruct((B, E), jnp.float32),  # z_v
    )

    return pl.pallas_call(
        equiav_kernel,
        out_shape=out_shape,
        in_specs=[smem_spec] + [vmem_spec] * 10,
        out_specs=(vmem_spec, vmem_spec, vmem_spec, vmem_spec),
    )(
        inv_t,
        a_all, v_all,
        params["wa1"].astype(bf16), params["ba1"],
        params["wa2"].astype(bf16), params["ba2"],
        params["wv1"].astype(bf16), params["bv1"],
        params["wv2"].astype(bf16), params["bv2"],
    )


if __name__ == "__main__":
    key = jax.random.PRNGKey(0)
    k_p, k_a, k_v, k_aa, k_va = jax.random.split(key, 5)

    params = init_params(k_p)
    data_a = jax.random.normal(k_a, (B, D), jnp.float32)
    data_v = jax.random.normal(k_v, (B, D), jnp.float32)
    data_a_aug = jax.random.normal(k_aa, (B, D), jnp.float32)
    data_v_aug = jax.random.normal(k_va, (B, D), jnp.float32)
    t_a = 0.07
    t_v = 0.10

    outs = wrapped_model_forward(params, data_a, data_v, data_a_aug, data_v_aug,
                                 t_a, t_v, label=None, t_a_list=None, t_v_list=None)
    jax.block_until_ready(outs)
    print("KERNEL_OK")
</pallas_src>

<mosaic_0001>
module attributes {stable_mosaic.version = 11 : i64} {
  func.func @equiav_kernel(%arg0: memref<2xf32, #tpu.memory_space<smem>>, %arg1: memref<16x128xf32, #tpu.memory_space<vmem>>, %arg2: memref<16x128xf32, #tpu.memory_space<vmem>>, %arg3: memref<128x128xbf16, #tpu.memory_space<vmem>>, %arg4: memref<1x128xf32, #tpu.memory_space<vmem>>, %arg5: memref<128x128xbf16, #tpu.memory_space<vmem>>, %arg6: memref<1x128xf32, #tpu.memory_space<vmem>>, %arg7: memref<128x128xbf16, #tpu.memory_space<vmem>>, %arg8: memref<1x128xf32, #tpu.memory_space<vmem>>, %arg9: memref<128x128xbf16, #tpu.memory_space<vmem>>, %arg10: memref<1x128xf32, #tpu.memory_space<vmem>>, %arg11: memref<8x8xf32, #tpu.memory_space<vmem>>, %arg12: memref<8x8xf32, #tpu.memory_space<vmem>>, %arg13: memref<8x128xf32, #tpu.memory_space<vmem>>, %arg14: memref<8x128xf32, #tpu.memory_space<vmem>>) attributes {dimension_semantics = [], scalar_prefetch = 0 : i64, scratch_operands = 0 : i64, tpu.core_type = #tpu.core_type<tc>} {
    %c0 = arith.constant 0 : index
    %c0_0 = arith.constant 0 : index
    %0 = vector.load %arg1[%c0, %c0_0] : memref<16x128xf32, #tpu.memory_space<vmem>>, vector<16x128xf32>
    %c0_1 = arith.constant 0 : index
    %c0_2 = arith.constant 0 : index
    %1 = vector.load %arg3[%c0_1, %c0_2] : memref<128x128xbf16, #tpu.memory_space<vmem>>, vector<128x128xbf16>
    %c0_3 = arith.constant 0 : index
    %c0_4 = arith.constant 0 : index
    %2 = vector.load %arg4[%c0_3, %c0_4] : memref<1x128xf32, #tpu.memory_space<vmem>>, vector<1x128xf32>
    %c0_5 = arith.constant 0 : index
    %c0_6 = arith.constant 0 : index
    %3 = vector.load %arg5[%c0_5, %c0_6] : memref<128x128xbf16, #tpu.memory_space<vmem>>, vector<128x128xbf16>
    %c0_7 = arith.constant 0 : index
    %c0_8 = arith.constant 0 : index
    %4 = vector.load %arg6[%c0_7, %c0_8] : memref<1x128xf32, #tpu.memory_space<vmem>>, vector<1x128xf32>
    %5 = arith.truncf %0 : vector<16x128xf32> to vector<16x128xbf16>
    %cst = arith.constant dense<0.000000e+00> : vector<16x128xf32>
    %6 = tpu.matmul %5, %1, %cst {dimension_numbers = #tpu.dot_dimension_numbers<[1], [0], [0], [1], [0, 0, 1, 1], [], []>} : vector<16x128xbf16>, vector<128x128xbf16>, vector<16x128xf32> -> vector<16x128xf32>
    %7 = vector.broadcast %2 : vector<1x128xf32> to vector<16x128xf32>
    %8 = arith.addf %6, %7 : vector<16x128xf32>
    %9 = arith.mulf %8, %8 : vector<16x128xf32>
    %10 = arith.mulf %8, %9 : vector<16x128xf32>
    %cst_9 = arith.constant 4.471500e-02 : f32
    %11 = vector.broadcast %cst_9 : f32 to vector<16x128xf32>
    %12 = arith.mulf %11, %10 : vector<16x128xf32>
    %13 = arith.addf %8, %12 : vector<16x128xf32>
    %cst_10 = arith.constant 0.797884583 : f32
    %14 = vector.broadcast %cst_10 : f32 to vector<16x128xf32>
    %15 = arith.mulf %14, %13 : vector<16x128xf32>
    %16 = math.tanh %15 : vector<16x128xf32>
    %cst_11 = arith.constant 1.000000e+00 : f32
    %17 = vector.broadcast %cst_11 : f32 to vector<16x128xf32>
    %18 = arith.addf %17, %16 : vector<16x128xf32>
    %cst_12 = arith.constant 5.000000e-01 : f32
    %19 = vector.broadcast %cst_12 : f32 to vector<16x128xf32>
    %20 = arith.mulf %19, %18 : vector<16x128xf32>
    %21 = arith.mulf %8, %20 : vector<16x128xf32>
    %22 = arith.truncf %21 : vector<16x128xf32> to vector<16x128xbf16>
    %cst_13 = arith.constant dense<0.000000e+00> : vector<16x128xf32>
    %23 = tpu.matmul %22, %3, %cst_13 {dimension_numbers = #tpu.dot_dimension_numbers<[1], [0], [0], [1], [0, 0, 1, 1], [], []>} : vector<16x128xbf16>, vector<128x128xbf16>, vector<16x128xf32> -> vector<16x128xf32>
    %24 = vector.broadcast %4 : vector<1x128xf32> to vector<16x128xf32>
    %25 = arith.addf %23, %24 : vector<16x128xf32>
    %26 = arith.mulf %25, %25 : vector<16x128xf32>
    %cst_14 = arith.constant dense<0.000000e+00> : vector<16xf32>
    %27 = vector.multi_reduction <add>, %26, %cst_14 [1] : vector<16x128xf32> to vector<16xf32>
    %28 = vector.shape_cast %27 : vector<16xf32> to vector<16x1xf32>
    %cst_15 = arith.constant 1.000000e-24 : f32
    %29 = vector.broadcast %cst_15 : f32 to vector<16x1xf32>
    %30 = arith.maximumf %28, %29 : vector<16x1xf32>
    %31 = math.rsqrt %30 : vector<16x1xf32>
    %32 = vector.broadcast %31 : vector<16x1xf32> to vector<16x128xf32>
    %33 = arith.mulf %25, %32 : vector<16x128xf32>
    %c0_16 = arith.constant 0 : index
    %c0_17 = arith.constant 0 : index
    %34 = vector.load %arg2[%c0_16, %c0_17] : memref<16x128xf32, #tpu.memory_space<vmem>>, vector<16x128xf32>
    %c0_18 = arith.constant 0 : index
    %c0_19 = arith.constant 0 : index
    %35 = vector.load %arg7[%c0_18, %c0_19] : memref<128x128xbf16, #tpu.memory_space<vmem>>, vector<128x128xbf16>
    %c0_20 = arith.constant 0 : index
    %c0_21 = arith.constant 0 : index
    %36 = vector.load %arg8[%c0_20, %c0_21] : memref<1x128xf32, #tpu.memory_space<vmem>>, vector<1x128xf32>
    %c0_22 = arith.constant 0 : index
    %c0_23 = arith.constant 0 : index
    %37 = vector.load %arg9[%c0_22, %c0_23] : memref<128x128xbf16, #tpu.memory_space<vmem>>, vector<128x128xbf16>
    %c0_24 = arith.constant 0 : index
    %c0_25 = arith.constant 0 : index
    %38 = vector.load %arg10[%c0_24, %c0_25] : memref<1x128xf32, #tpu.memory_space<vmem>>, vector<1x128xf32>
    %39 = arith.truncf %34 : vector<16x128xf32> to vector<16x128xbf16>
    %cst_26 = arith.constant dense<0.000000e+00> : vector<16x128xf32>
    %40 = tpu.matmul %39, %35, %cst_26 {dimension_numbers = #tpu.dot_dimension_numbers<[1], [0], [0], [1], [0, 0, 1, 1], [], []>} : vector<16x128xbf16>, vector<128x128xbf16>, vector<16x128xf32> -> vector<16x128xf32>
    %41 = vector.broadcast %36 : vector<1x128xf32> to vector<16x128xf32>
    %42 = arith.addf %40, %41 : vector<16x128xf32>
    %43 = arith.mulf %42, %42 : vector<16x128xf32>
    %44 = arith.mulf %42, %43 : vector<16x128xf32>
    %cst_27 = arith.constant 4.471500e-02 : f32
    %45 = vector.broadcast %cst_27 : f32 to vector<16x128xf32>
    %46 = arith.mulf %45, %44 : vector<16x128xf32>
    %47 = arith.addf %42, %46 : vector<16x128xf32>
    %cst_28 = arith.constant 0.797884583 : f32
    %48 = vector.broadcast %cst_28 : f32 to vector<16x128xf32>
    %49 = arith.mulf %48, %47 : vector<16x128xf32>
    %50 = math.tanh %49 : vector<16x128xf32>
    %cst_29 = arith.constant 1.000000e+00 : f32
    %51 = vector.broadcast %cst_29 : f32 to vector<16x128xf32>
    %52 = arith.addf %51, %50 : vector<16x128xf32>
    %cst_30 = arith.constant 5.000000e-01 : f32
    %53 = vector.broadcast %cst_30 : f32 to vector<16x128xf32>
    %54 = arith.mulf %53, %52 : vector<16x128xf32>
    %55 = arith.mulf %42, %54 : vector<16x128xf32>
    %56 = arith.truncf %55 : vector<16x128xf32> to vector<16x128xbf16>
    %cst_31 = arith.constant dense<0.000000e+00> : vector<16x128xf32>
    %57 = tpu.matmul %56, %37, %cst_31 {dimension_numbers = #tpu.dot_dimension_numbers<[1], [0], [0], [1], [0, 0, 1, 1], [], []>} : vector<16x128xbf16>, vector<128x128xbf16>, vector<16x128xf32> -> vector<16x128xf32>
    %58 = vector.broadcast %38 : vector<1x128xf32> to vector<16x128xf32>
    %59 = arith.addf %57, %58 : vector<16x128xf32>
    %60 = arith.mulf %59, %59 : vector<16x128xf32>
    %cst_32 = arith.constant dense<0.000000e+00> : vector<16xf32>
    %61 = vector.multi_reduction <add>, %60, %cst_32 [1] : vector<16x128xf32> to vector<16xf32>
    %62 = vector.shape_cast %61 : vector<16xf32> to vector<16x1xf32>
    %cst_33 = arith.constant 1.000000e-24 : f32
    %63 = vector.broadcast %cst_33 : f32 to vector<16x1xf32>
    %64 = arith.maximumf %62, %63 : vector<16x1xf32>
    %65 = math.rsqrt %64 : vector<16x1xf32>
    %66 = vector.broadcast %65 : vector<16x1xf32> to vector<16x128xf32>
    %67 = arith.mulf %59, %66 : vector<16x128xf32>
    %68 = vector.extract_strided_slice %33 {offsets = [0, 0], sizes = [8, 128], strides = [1, 1]} : vector<16x128xf32> to vector<8x128xf32>
    %69 = vector.extract_strided_slice %33 {offsets = [8, 0], sizes = [8, 128], strides = [1, 1]} : vector<16x128xf32> to vector<8x128xf32>
    %70 = vector.extract_strided_slice %67 {offsets = [0, 0], sizes = [8, 128], strides = [1, 1]} : vector<16x128xf32> to vector<8x128xf32>
    %71 = vector.extract_strided_slice %67 {offsets = [8, 0], sizes = [8, 128], strides = [1, 1]} : vector<16x128xf32> to vector<8x128xf32>
    %c0_34 = arith.constant 0 : index
    %72 = memref.load %arg0[%c0_34] : memref<2xf32, #tpu.memory_space<smem>>
    %c1 = arith.constant 1 : index
    %73 = memref.load %arg0[%c1] : memref<2xf32, #tpu.memory_space<smem>>
    %cst_35 = arith.constant dense<0.000000e+00> : vector<8x8xf32>
    %74 = tpu.matmul %68, %70, %cst_35 {dimension_numbers = #tpu.dot_dimension_numbers<[1], [1], [0], [0], [0, 0, 1, 0], [], []>} : vector<8x128xf32>, vector<8x128xf32>, vector<8x8xf32> -> vector<8x8xf32>
    %75 = vector.broadcast %72 : f32 to vector<8x8xf32>
    %76 = arith.mulf %74, %75 : vector<8x8xf32>
    %cst_36 = arith.constant dense<0.000000e+00> : vector<8x8xf32>
    %77 = tpu.matmul %69, %71, %cst_36 {dimension_numbers = #tpu.dot_dimension_numbers<[1], [1], [0], [0], [0, 0, 1, 0], [], []>} : vector<8x128xf32>, vector<8x128xf32>, vector<8x8xf32> -> vector<8x8xf32>
    %78 = vector.broadcast %73 : f32 to vector<8x8xf32>
    %79 = arith.mulf %77, %78 : vector<8x8xf32>
    %c0_37 = arith.constant 0 : index
    %c0_38 = arith.constant 0 : index
    %80 = vector.load %arg11[%c0_37, %c0_38] : memref<8x8xf32, #tpu.memory_space<vmem>>, vector<8x8xf32>
    tpu.vector_store %arg11[%c0_37, %c0_38], %76 {strides = array<i32>} : memref<8x8xf32, #tpu.memory_space<vmem>>, vector<8x8xf32>,
    %c0_39 = arith.constant 0 : index
    %c0_40 = arith.constant 0 : index
    %81 = vector.load %arg12[%c0_39, %c0_40] : memref<8x8xf32, #tpu.memory_space<vmem>>, vector<8x8xf32>
    tpu.vector_store %arg12[%c0_39, %c0_40], %79 {strides = array<i32>} : memref<8x8xf32, #tpu.memory_space<vmem>>, vector<8x8xf32>,
    %c0_41 = arith.constant 0 : index
    %c0_42 = arith.constant 0 : index
    %82 = vector.load %arg13[%c0_41, %c0_42] : memref<8x128xf32, #tpu.memory_space<vmem>>, vector<8x128xf32>
    tpu.vector_store %arg13[%c0_41, %c0_42], %68 {strides = array<i32>} : memref<8x128xf32, #tpu.memory_space<vmem>>, vector<8x128xf32>,
    %c0_43 = arith.constant 0 : index
    %c0_44 = arith.constant 0 : index
    %83 = vector.load %arg14[%c0_43, %c0_44] : memref<8x128xf32, #tpu.memory_space<vmem>>, vector<8x128xf32>
    tpu.vector_store %arg14[%c0_43, %c0_44], %70 {strides = array<i32>} : memref<8x128xf32, #tpu.memory_space<vmem>>, vector<8x128xf32>,
    return
  }
}

</mosaic_0001>

<bundles_post_ra>
// kernel: tpu_custom_call.1
= control target key start
LH: loop header
LB: loop body
LE: loop exit
PB: predicated region body
PF: predicated region fallthrough
CT: control target
= control target key end

     0   :  { %20 = vsyncpa [#allocation5], 0  ;;  %s1663_s0 = inlined_call_operand.hbm [shape: f32[2], index: 0, kind: input, shape index: {}]   ;;  %s1664_s1 = inlined_call_operand.hbm [shape: f32[16,128], index: 1, kind: input, shape index: {}]   ;;  %s1665_s2 = inlined_call_operand.hbm [shape: f32[16,128], index: 2, kind: input, shape index: {}]   ;;  %s1666_s3 = inlined_call_operand.hbm [shape: bf16[128,128], index: 3, kind: input, shape index: {}]   ;;  %s1667_s4 = inlined_call_operand.vmem [shape: f32[1,128], index: 4, kind: input, shape index: {}]   ;;  %s1668_s5 = inlined_call_operand.hbm [shape: bf16[128,128], index: 5, kind: input, shape index: {}]   ;;  %s1669_s6 = inlined_call_operand.vmem [shape: f32[1,128], index: 6, kind: input, shape index: {}]   ;;  %s1670_s7 = inlined_call_operand.hbm [shape: bf16[128,128], index: 7, kind: input, shape index: {}]   ;;  %s1671_s8 = inlined_call_operand.vmem [shape: f32[1,128], index: 8, kind: input, shape index: {}]   ;;  %s1672_s9 = inlined_call_operand.hbm [shape: bf16[128,128], index: 9, kind: input, shape index: {}]   ;;  %s1673_s10 = inlined_call_operand.vmem [shape: f32[1,128], index: 10, kind: input, shape index: {}]   ;;  %s1674_s11 = inlined_call_operand.hbm [shape: f32[8,8], index: 11, kind: output, shape index: {0}]   ;;  %s1675_s12 = inlined_call_operand.hbm [shape: f32[8,8], index: 12, kind: output, shape index: {1}]   ;;  %s1676_s13 = inlined_call_operand.hbm [shape: f32[8,128], index: 13, kind: output, shape index: {2}]   ;;  %s1677_s14 = inlined_call_operand.hbm [shape: f32[8,128], index: 14, kind: output, shape index: {3}]  }
   0x1   :  { %21 = vsyncpa [#allocation3], 0 }
   0x2   :  { %22 = vsyncpa [#allocation8], 0 }
   0x3   :  { %23 = vsyncpa [#allocation11], 0 }
   0x4   :  { %24 = vsyncpa [#allocation14], 0 }
   0x5   :  { %25 = vsyncpa [#allocation4], 0 }
   0x6   :  { %26 = vsyncpa [#allocation17], 0 }
   0x7   :  { %27 = vsyncpa [#allocation20], 0  ;;  %s1344_s29 = smov [#allocation7]   ;;  %s1098_s17 = scalar_lea.hbm %s1665_s2, 256 }
   0x8   :  { %s53_s30 = sshll.u32 %s1344_s29, 4  ;;  %p1099_p0 = scmp.ne.s32.totalorder %s1665_s2, %s1098_s17  ;;  %s54_s30 = int_to_ptr.vmem [resolvable:$true] %s53_s30 }
   0x9   :  { %p1102_p1 = scmp.lt.u32.totalorder %s1098_s17, %s1665_s2 }
   0xb   :  { %p1104_p2 = pnand %p1102_p1, %p1099_p0 }
   0xd   :  { %1107 = shalt.err (!%p1104_p2)
}
   0xe   :  { %s1108_s22 = scalar_lea.vmem %s54_s30, 256  ;;  %p1113_p4 = scmp.lt.s32.totalorder %s54_s30, %s54_s30 }
   0xf   :  { %p1109_p3 = scmp.ne.s32.totalorder %s54_s30, %s1108_s22  ;;  %p1114_p5 = scmp.lt.s32.totalorder %s1108_s22, %s1108_s22 }
  0x11   :  { %p1115_p6 = por %p1114_p5, %p1113_p4 }
  0x13   :  { %p1116_p7 = pnand %p1115_p6, %p1109_p3 }
  0x15   :  { %1119 = shalt.err (!%p1116_p7)
}
  0x16   :  { %s1345_s23 = smov 128   ;;  %s1346_s24 = smov 8  }
  0x17   :  { %59 = dma.hbm_to_vmem [thread:$0]  %s1665_s2, 256, %s54_s30, [#allocation8], %s1345_s23, %s1345_s23, %s1346_s24  }
  0x18   :  { %s1347_s27 = smov [#allocation10]   ;;  %s1120_s16 = scalar_lea.hbm %s1668_s5, 1024 }
  0x19   :  { %s79_s28 = sshll.u32 %s1347_s27, 4  ;;  %p1121_p8 = scmp.ne.s32.totalorder %s1668_s5, %s1120_s16  ;;  %s80_s28 = int_to_ptr.vmem [resolvable:$true] %s79_s28 }
  0x1a   :  { %p1124_p9 = scmp.lt.u32.totalorder %s1120_s16, %s1668_s5 }
  0x1c   :  { %p1126_p10 = pnand %p1124_p9, %p1121_p8 }
  0x1e   :  { %1129 = shalt.err (!%p1126_p10)
}
  0x1f   :  { %s1130_s21 = scalar_lea.vmem %s80_s28, 1024  ;;  %p1135_p12 = scmp.lt.s32.totalorder %s80_s28, %s80_s28 }
  0x20   :  { %p1131_p11 = scmp.ne.s32.totalorder %s80_s28, %s1130_s21  ;;  %p1136_p13 = scmp.lt.s32.totalorder %s1130_s21, %s1130_s21 }
  0x22   :  { %p1137_p0 = por %p1136_p13, %p1135_p12 }
  0x24   :  { %p1138_p1 = pnand %p1137_p0, %p1131_p11 }
  0x26   :  { %1141 = shalt.err (!%p1138_p1)
}
  0x27   :  { %s1678_s2 = smov 64   ;;  %s1349_s30 = smov 4  }
  0x28   :  { %85 = dma.hbm_to_vmem [thread:$0]  %s1668_s5, 1024, %s80_s28, [#allocation11], %s1678_s2, %s1678_s2, %s1349_s30  }
  0x29   :  { %s1142_s29 = scalar_lea.hbm %s1663_s0, 16 }
  0x2a   :  { %p1143_p2 = scmp.ne.s32.totalorder %s1663_s0, %s1142_s29  ;;  %p1146_p3 = scmp.lt.u32.totalorder %s1142_s29, %s1663_s0 }
  0x2c   :  { %p1148_p4 = pnand %p1146_p3, %p1143_p2 }
  0x2e   :  { %1151 = shalt.err (!%p1148_p4)
}
  0x2f   :  { %s1350_s19 = smov [#allocation2]   ;;  %s1351_s5 = smov [#allocation6]  }
  0x30   :  { %35 = dma.hbm_to_smem %s1663_s0, 16, %s1350_s19, [#allocation5]  }
  0x31   :  { %s41_s28 = sshll.u32 %s1351_s5, 4  ;;  %s1352_s22 = smov [#allocation9]   ;;  %s42_s28 = int_to_ptr.vmem [resolvable:$true] %s41_s28 }
  0x32   :  { %s65_s25 = sshll.u32 %s1352_s22, 4  ;;  %s1152_s15 = scalar_lea.hbm %s1664_s1, 256  ;;  %s66_s25 = int_to_ptr.vmem [resolvable:$true] %s65_s25 }
  0x33   :  { %p1153_p5 = scmp.ne.s32.totalorder %s1664_s1, %s1152_s15  ;;  %p1156_p6 = scmp.lt.u32.totalorder %s1152_s15, %s1664_s1 }
  0x35   :  { %p1158_p7 = pnand %p1156_p6, %p1153_p5 }
  0x37   :  { %1161 = shalt.err (!%p1158_p7)
}
  0x38   :  { %s1162_s0 = scalar_lea.vmem %s42_s28, 256  ;;  %p1167_p9 = scmp.lt.s32.totalorder %s42_s28, %s42_s28 }
  0x39   :  { %p1163_p8 = scmp.ne.s32.totalorder %s42_s28, %s1162_s0  ;;  %p1168_p10 = scmp.lt.s32.totalorder %s1162_s0, %s1162_s0 }
  0x3b   :  { %p1169_p11 = por %p1168_p10, %p1167_p9 }
  0x3d   :  { %p1170_p12 = pnand %p1169_p11, %p1163_p8 }
  0x3f   :  { %1173 = shalt.err (!%p1170_p12)
}
  0x40   :  { %47 = dma.hbm_to_vmem [thread:$0]  %s1664_s1, 256, %s42_s28, [#allocation3], %s1345_s23, %s1345_s23, %s1346_s24  }
  0x41   :  { %s1174_s21 = scalar_lea.hbm %s1666_s3, 1024 }
  0x42   :  { %p1175_p13 = scmp.ne.s32.totalorder %s1666_s3, %s1174_s21  ;;  %p1178_p0 = scmp.lt.u32.totalorder %s1174_s21, %s1666_s3 }
  0x44   :  { %p1180_p1 = pnand %p1178_p0, %p1175_p13 }
  0x46   :  { %1183 = shalt.err (!%p1180_p1)
}
  0x47   :  { %s1184_s15 = scalar_lea.vmem %s66_s25, 1024  ;;  %p1189_p3 = scmp.lt.s32.totalorder %s66_s25, %s66_s25 }
  0x48   :  { %p1185_p2 = scmp.ne.s32.totalorder %s66_s25, %s1184_s15  ;;  %p1190_p4 = scmp.lt.s32.totalorder %s1184_s15, %s1184_s15 }
  0x4a   :  { %p1191_p5 = por %p1190_p4, %p1189_p3 }
  0x4c   :  { %p1192_p6 = pnand %p1191_p5, %p1185_p2 }
  0x4e   :  { %1195 = shalt.err (!%p1192_p6)
}
  0x4f   :  { %s1680_s1 = smov 64   ;;  %s1353_s28 = smov [#allocation12]  }
  0x50   :  { %71 = dma.hbm_to_vmem [thread:$0]  %s1666_s3, 1024, %s66_s25, [#allocation8], %s1680_s1, %s1680_s1, %s1349_s30  }
  0x51   :  { %s93_s16 = sshll.u32 %s1353_s28, 4  ;;  %s1354_s29 = smov [#allocation13]   ;;  %s94_s16 = int_to_ptr.vmem [resolvable:$true] %s93_s16 }
  0x52   :  { %s107_s17 = sshll.u32 %s1354_s29, 4  ;;  %s1196_s19 = scalar_lea.hbm %s1670_s7, 1024  ;;  %s108_s17 = int_to_ptr.vmem [resolvable:$true] %s107_s17 }
  0x53   :  { %p1197_p7 = scmp.ne.s32.totalorder %s1670_s7, %s1196_s19  ;;  %p1200_p8 = scmp.lt.u32.totalorder %s1196_s19, %s1670_s7 }
  0x55   :  { %p1202_p9 = pnand %p1200_p8, %p1197_p7 }
  0x57   :  { %1205 = shalt.err (!%p1202_p9)
}
  0x58   :  { %s1206_s3 = scalar_lea.vmem %s94_s16, 1024  ;;  %p1211_p11 = scmp.lt.s32.totalorder %s94_s16, %s94_s16 }
  0x59   :  { %p1207_p10 = scmp.ne.s32.totalorder %s94_s16, %s1206_s3  ;;  %p1212_p12 = scmp.lt.s32.totalorder %s1206_s3, %s1206_s3 }
  0x5b   :  { %p1213_p13 = por %p1212_p12, %p1211_p11 }
  0x5d   :  { %p1214_p0 = pnand %p1213_p13, %p1207_p10 }
  0x5f   :  { %1217 = shalt.err (!%p1214_p0)
}
  0x60   :  { %99 = dma.hbm_to_vmem [thread:$0]  %s1670_s7, 1024, %s94_s16, [#allocation11], %s1680_s1, %s1680_s1, %s1349_s30  }
  0x61   :  { %s1218_s15 = scalar_lea.hbm %s1672_s9, 1024 }
  0x62   :  { %p1219_p1 = scmp.ne.s32.totalorder %s1672_s9, %s1218_s15  ;;  %p1222_p2 = scmp.lt.u32.totalorder %s1218_s15, %s1672_s9 }
  0x64   :  { %p1224_p3 = pnand %p1222_p2, %p1219_p1 }
  0x66   :  { %1227 = shalt.err (!%p1224_p3)
}
  0x67   :  { %s1228_s0 = scalar_lea.vmem %s108_s17, 1024  ;;  %p1233_p5 = scmp.lt.s32.totalorder %s108_s17, %s108_s17 }
  0x68   :  { %p1229_p4 = scmp.ne.s32.totalorder %s108_s17, %s1228_s0  ;;  %p1234_p6 = scmp.lt.s32.totalorder %s1228_s0, %s1228_s0 }
  0x6a   :  { %p1235_p7 = por %p1234_p6, %p1233_p5 }
  0x6c   :  { %p1236_p8 = pnand %p1235_p7, %p1229_p4 }
  0x6e   :  { %1239 = shalt.err (!%p1236_p8)
}
  0x6f   :  { %113 = dma.hbm_to_vmem [thread:$0]  %s1672_s9, 1024, %s108_s17, [#allocation14], %s1680_s1, %s1680_s1, %s1349_s30  }
  0x70   :  { %1328 = dma.done.wait [#allocation5], 16  }
  0x71   :  { %1329 = vsyncadd [#allocation5], 4294967280 }
  0x72   :  { %1330 = dma.done.wait [#allocation3], 256  }
  0x73   :  { %1331 = vsyncadd [#allocation3], 4294967040 }
  0x74   :  { %1332 = dma.done.wait [#allocation8], 1280  }
  0x75   :  { %1333 = vsyncadd [#allocation8], 4294966016 }
  0x76   :  { %1334 = dma.done.wait [#allocation11], 2048  }
  0x77   :  { %1335 = vsyncadd [#allocation11], 4294965248 }
  0x78   :  { %1336 = dma.done.wait [#allocation14], 1024  }
  0x79   :  { %1337 = vsyncadd [#allocation14], 4294966272 }
  0x7a   :  { %137 = sfence }
  0x7b   :  { %v1050_v0 = vld [vmem:[#allocation9] sm:$0xff]   ;;  %v1355_v1 = vmov 0.0   ;;  %v1051_v2 = vld [vmem:[#allocation9 + $0x8] sm:$0xff]   ;;  %vm1356_vm0 = vmmov 0   ;;  %v1052_v3 = vld [vmem:[#allocation9 + $0x10] sm:$0xff]  }
  0x7c   :  { %943 = vmatprep.subr.bf16.mxu0 %v1355_v1  ;;  %963 = vmatprep.subr.bf16.mxu1 %v1355_v1  ;;  %v1053_v4 = vld [vmem:[#allocation9 + $0x18] sm:$0xff]   ;;  %v1054_v5 = vld [vmem:[#allocation9 + $0x20] sm:$0xff]   ;;  %v1055_v6 = vld [vmem:[#allocation9 + $0x28] sm:$0xff]  }
  0x7d   :  { %944 = vmatpush3.bf16.msra.mxu0 %v1050_v0  ;;  %959 = vmatprep.mubr.msk.bf16.mxu0 %vm1356_vm0, %v1355_v1  ;;  %v1056_v7 = vld [vmem:[#allocation9 + $0x30] sm:$0xff]   ;;  %v1057_v8 = vld [vmem:[#allocation9 + $0x38] sm:$0xff]   ;;  %v139_v9 = vld [vmem:[#allocation6] sm:$0xff] }
  0x7e   :  { %945 = vmatprep.subr.bf16.mxu0 %v1355_v1  ;;  %979 = vmatprep.mubr.msk.bf16.mxu1 %vm1356_vm0, %v1355_v1  ;;  %v140_v10 = vld [vmem:[#allocation6 + $0x8] sm:$0xff]  ;;  %v1058_v12 = vld [vmem:[#allocation12] sm:$0xff]   ;;  %v1060_v14 = vld [vmem:[#allocation12 + $0x10] sm:$0xff]  }
  0x7f   :  { %v175_v11 = vpack.c.bf16 %v140_v10, %v139_v9  ;;  %v1059_v13 = vld [vmem:[#allocation12 + $0x8] sm:$0xff]   ;;  %v1061_v15 = vld [vmem:[#allocation12 + $0x18] sm:$0xff]   ;;  %v1062_v16 = vld [vmem:[#allocation12 + $0x20] sm:$0xff]  }
  0x80   :  { %v1063_v17 = vld [vmem:[#allocation12 + $0x28] sm:$0xff]   ;;  %v1064_v18 = vld [vmem:[#allocation12 + $0x30] sm:$0xff]   ;;  %v1065_v19 = vld [vmem:[#allocation12 + $0x38] sm:$0xff]  }
  0x81   :  { %946 = vmatpush3.bf16.msra.mxu0 %v1051_v2  ;;  %v397_v20 = vld [vmem:[#allocation7] sm:$0xff]  ;;  %v398_v21 = vld [vmem:[#allocation7 + $0x8] sm:$0xff]  ;;  %v1066_v23 = vld [vmem:[#allocation10] sm:$0xff]  }
  0x82   :  { %947 = vmatprep.subr.bf16.mxu0 %v1355_v1  ;;  %v433_v22 = vpack.c.bf16 %v398_v21, %v397_v20  ;;  %964 = vmatpush3.bf16.msra.mxu1 %v1066_v23  ;;  %v1067_v24 = vld [vmem:[#allocation10 + $0x8] sm:$0xff]   ;;  %v1068_v25 = vld [vmem:[#allocation10 + $0x10] sm:$0xff]   ;;  %v1069_v26 = vld [vmem:[#allocation10 + $0x18] sm:$0xff]  }
  0x83   :  { %965 = vmatprep.subr.bf16.mxu1 %v1355_v1  ;;  %v1070_v27 = vld [vmem:[#allocation10 + $0x20] sm:$0xff]   ;;  %v1071_v28 = vld [vmem:[#allocation10 + $0x28] sm:$0xff]   ;;  %v1072_v29 = vld [vmem:[#allocation10 + $0x30] sm:$0xff]  }
  0x84   :  { %v1073_v30 = vld [vmem:[#allocation10 + $0x38] sm:$0xff]   ;;  %v866_v31 = vld [vmem:[%s1667_s4] ss:$0 sm:$0xff] }
  0x85   :  { %948 = vmatpush3.bf16.msra.mxu0 %v1052_v3  ;;  %v884_v54 = vld [vmem:[%s1671_s8] ss:$0 sm:$0xff]  ;;  %v1075_v3 = vld [vmem:[#allocation13 + $0x8] sm:$0xff]   ;;  %v1081_v23 = vld [vmem:[#allocation13 + $0x38] sm:$0xff]  }
  0x86   :  { %949 = vmatprep.subr.bf16.mxu0 %v1355_v1  ;;  %966 = vmatpush3.bf16.msra.mxu1 %v1067_v24  ;;  %v1074_v57 = vld [vmem:[#allocation13] sm:$0xff]  }
  0x87   :  { %967 = vmatprep.subr.bf16.mxu1 %v1355_v1 }
  0x89   :  { %950 = vmatpush3.bf16.msra.mxu0 %v1053_v4 }
  0x8a   :  { %951 = vmatprep.subr.bf16.mxu0 %v1355_v1  ;;  %968 = vmatpush3.bf16.msra.mxu1 %v1068_v25 }
  0x8b   :  { %969 = vmatprep.subr.bf16.mxu1 %v1355_v1 }
  0x8d   :  { %952 = vmatpush3.bf16.msra.mxu0 %v1054_v5 }
  0x8e   :  { %953 = vmatprep.subr.bf16.mxu0 %v1355_v1  ;;  %970 = vmatpush3.bf16.msra.mxu1 %v1069_v26 }
  0x8f   :  { %971 = vmatprep.subr.bf16.mxu1 %v1355_v1 }
  0x91   :  { %954 = vmatpush3.bf16.msra.mxu0 %v1055_v6 }
  0x92   :  { %955 = vmatprep.subr.bf16.mxu0 %v1355_v1  ;;  %972 = vmatpush3.bf16.msra.mxu1 %v1070_v27 }
  0x93   :  { %973 = vmatprep.subr.bf16.mxu1 %v1355_v1 }
  0x95   :  { %956 = vmatpush3.bf16.msra.mxu0 %v1056_v7 }
  0x96   :  { %957 = vmatprep.subr.bf16.mxu0 %v1355_v1  ;;  %974 = vmatpush3.bf16.msra.mxu1 %v1071_v28 }
  0x97   :  { %975 = vmatprep.subr.bf16.mxu1 %v1355_v1 }
  0x99   :  { %958 = vmatpush3.bf16.msra.mxu0 %v1057_v8  ;;  %v1076_v8 = vld [vmem:[#allocation13 + $0x10] sm:$0xff]  }
  0x9a   :  { %983 = vmatprep.subr.bf16.mxu0 %v1355_v1  ;;  %976 = vmatpush3.bf16.msra.mxu1 %v1072_v29 }
  0x9b   :  { %977 = vmatprep.subr.bf16.mxu1 %v1355_v1 }
  0x9c   :  { %960 = vmatmul.mubr.bf16.vlgmr.msra.gmra.mrb[0].mxu0 %v175_v11 }
  0x9d   :  { %984 = vmatpush3.bf16.msra.mxu0 %v1058_v12  ;;  %999 = vmatprep.mubr.msk.bf16.mxu0 %vm1356_vm0, %v1355_v1 }
  0x9e   :  { %985 = vmatprep.subr.bf16.mxu0 %v1355_v1  ;;  %978 = vmatpush3.bf16.msra.mxu1 %v1073_v30  ;;  %v875_v30 = vld [vmem:[%s1669_s6] ss:$0 sm:$0xff]  ;;  %s1357_s6 = smov [#allocation19]  }
  0x9f   :  { %1003 = vmatprep.subr.bf16.mxu1 %v1355_v1 }
  0xa1   :  { %986 = vmatpush3.bf16.msra.mxu0 %v1059_v13  ;;  %v1077_v13 = vld [vmem:[#allocation13 + $0x18] sm:$0xff]  }
  0xa2   :  { %987 = vmatprep.subr.bf16.mxu0 %v1355_v1 }
  0xa5   :  { %988 = vmatpush3.bf16.msra.mxu0 %v1060_v14 }
  0xa6   :  { %989 = vmatprep.subr.bf16.mxu0 %v1355_v1 }
  0xa9   :  { %990 = vmatpush3.bf16.msra.mxu0 %v1061_v15  ;;  %v1078_v15 = vld [vmem:[#allocation13 + $0x20] sm:$0xff]  }
  0xaa   :  { %991 = vmatprep.subr.bf16.mxu0 %v1355_v1 }
  0xad   :  { %992 = vmatpush3.bf16.msra.mxu0 %v1062_v16  ;;  %v1079_v16 = vld [vmem:[#allocation13 + $0x28] sm:$0xff]  }
  0xae   :  { %993 = vmatprep.subr.bf16.mxu0 %v1355_v1 }
  0xb1   :  { %994 = vmatpush3.bf16.msra.mxu0 %v1063_v17 }
  0xb2   :  { %995 = vmatprep.subr.bf16.mxu0 %v1355_v1 }
  0xb5   :  { %996 = vmatpush3.bf16.msra.mxu0 %v1064_v18  ;;  %v1080_v18 = vld [vmem:[#allocation13 + $0x30] sm:$0xff]  }
  0xb6   :  { %997 = vmatprep.subr.bf16.mxu0 %v1355_v1 }
  0xb9   :  { %998 = vmatpush3.bf16.msra.mxu0 %v1065_v19 }
  0xba   :  { %1023 = vmatprep.subr.mxu0 %v1355_v1 }
  0xbc   :  { %1000 = vmatmul.mubr.bf16.vlgmr.msra.gmra.mrb[4].mxu0 %v433_v22 }
  0xbd   :  { %1025 = vmatprep.mubr.msk.f32.mxu0 %vm1356_vm0, %v1355_v1 }
 0x16f   :  { %v264_v32 = vpop.f32.mrb[0].mxu0 }
 0x170   :  { %v265_v33 = vadd.f32 %v866_v31, %v264_v32  ;;  %v961_v34 = vpop.f32.mrb[1].mxu0 }
 0x171   :  { %v267_v35 = vpop.f32.mrb[2].mxu0 }
 0x172   :  { %v271_v36 = vmul.f32 %v265_v33, %v265_v33  ;;  %v268_v37 = vadd.f32 %v866_v31, %v267_v35  ;;  %v962_v38 = vpop.f32.mrb[3].mxu0 }
 0x174   :  { %v273_v39 = vmul.f32 %v271_v36, %v265_v33  ;;  %v272_v40 = vmul.f32 %v268_v37, %v268_v37 }
 0x176   :  { %v275_v41 = vmul.f32 0.044715, %v273_v39  ;;  %v274_v42 = vmul.f32 %v272_v40, %v268_v37 }
 0x178   :  { %v277_v43 = vadd.f32 %v275_v41, %v265_v33  ;;  %v276_v44 = vmul.f32 0.044715, %v274_v42 }
 0x17a   :  { %v279_v45 = vmul.f32 0.7978846, %v277_v43  ;;  %v278_v46 = vadd.f32 %v276_v44, %v268_v37 }
 0x17c   :  { %1082 = vtanh.f32 %v279_v45  ;;  %v280_v47 = vmul.f32 0.7978846, %v278_v46 }
 0x17e   :  { %1084 = vtanh.f32 %v280_v47 }
 0x186   :  { %v1083_v48 = vpop.eup %1082 }
 0x187   :  { %v283_v49 = vadd.f32 1.0, %v1083_v48 }
 0x188   :  { %v1085_v50 = vpop.eup %1084 }
 0x189   :  { %v284_v51 = vadd.f32 1.0, %v1085_v50  ;;  %v285_v52 = vmul.f32 0.5, %v283_v49 }
 0x18b   :  { %v286_v53 = vmul.f32 0.5, %v284_v51  ;;  %v287_v55 = vmul.f32 %v285_v52, %v265_v33 }
 0x18d   :  { %v288_v56 = vmul.f32 %v286_v53, %v268_v37 }
 0x18f   :  { %v522_v58 = vpop.f32.mrb[4].mxu0  ;;  %v289_v59 = vpack.c.bf16 %v288_v56, %v287_v55 }
 0x190   :  { %v523_v60 = vadd.f32 %v884_v54, %v522_v58  ;;  %v1001_v61 = vpop.f32.mrb[5].mxu0 }
 0x191   :  { %980 = vmatmul.mubr.bf16.vlgmr.msra.gmra.mrb[0].mxu1 %v289_v59  ;;  %v525_v62 = vpop.f32.mrb[6].mxu0 }
 0x192   :  { %v529_v63 = vmul.f32 %v523_v60, %v523_v60  ;;  %v526_v0 = vadd.f32 %v884_v54, %v525_v62  ;;  %v1002_v2 = vpop.f32.mrb[7].mxu0  ;;  %1004 = vmatpush3.bf16.msra.mxu1 %v1074_v57  ;;  %1019 = vmatprep.mubr.msk.bf16.mxu1 %vm1356_vm0, %v1355_v1 }
 0x193   :  { %1005 = vmatprep.subr.bf16.mxu1 %v1355_v1 }
 0x194   :  { %v531_v4 = vmul.f32 %v529_v63, %v523_v60  ;;  %v530_v5 = vmul.f32 %v526_v0, %v526_v0 }
 0x196   :  { %v533_v6 = vmul.f32 0.044715, %v531_v4  ;;  %v532_v7 = vmul.f32 %v530_v5, %v526_v0  ;;  %1006 = vmatpush3.bf16.msra.mxu1 %v1075_v3 }
 0x197   :  { %1007 = vmatprep.subr.bf16.mxu1 %v1355_v1 }
 0x198   :  { %v535_v9 = vadd.f32 %v533_v6, %v523_v60  ;;  %v534_v10 = vmul.f32 0.044715, %v532_v7 }
 0x19a   :  { %v537_v11 = vmul.f32 0.7978846, %v535_v9  ;;  %v536_v12 = vadd.f32 %v534_v10, %v526_v0  ;;  %1008 = vmatpush3.bf16.msra.mxu1 %v1076_v8 }
 0x19b   :  { %1009 = vmatprep.subr.bf16.mxu1 %v1355_v1 }
 0x19c   :  { %1086 = vtanh.f32 %v537_v11  ;;  %v538_v14 = vmul.f32 0.7978846, %v536_v12 }
 0x19e   :  { %1088 = vtanh.f32 %v538_v14  ;;  %1010 = vmatpush3.bf16.msra.mxu1 %v1077_v13 }
 0x19f   :  { %1011 = vmatprep.subr.bf16.mxu1 %v1355_v1 }
 0x1a2   :  { %1012 = vmatpush3.bf16.msra.mxu1 %v1078_v15 }
 0x1a3   :  { %1013 = vmatprep.subr.bf16.mxu1 %v1355_v1 }
 0x1a6   :  { %v1087_v17 = vpop.eup %1086  ;;  %1014 = vmatpush3.bf16.msra.mxu1 %v1079_v16 }
 0x1a7   :  { %v541_v19 = vadd.f32 1.0, %v1087_v17  ;;  %1015 = vmatprep.subr.bf16.mxu1 %v1355_v1 }
 0x1a8   :  { %v1089_v20 = vpop.eup %1088 }
 0x1a9   :  { %v543_v21 = vmul.f32 0.5, %v541_v19  ;;  %v542_v22 = vadd.f32 1.0, %v1089_v20 }
 0x1aa   :  { %1016 = vmatpush3.bf16.msra.mxu1 %v1080_v18 }
 0x1ab   :  { %v544_v24 = vmul.f32 0.5, %v542_v22  ;;  %1017 = vmatprep.subr.bf16.mxu1 %v1355_v1  ;;  %v545_v25 = vmul.f32 %v543_v21, %v523_v60 }
 0x1ad   :  { %v546_v26 = vmul.f32 %v544_v24, %v526_v0 }
 0x1ae   :  { %1018 = vmatpush3.bf16.msra.mxu1 %v1081_v23 }
 0x1af   :  { %v547_v27 = vpack.c.bf16 %v546_v26, %v545_v25  ;;  %1028 = vmatprep.subr.mxu1 %v1355_v1 }
 0x1b1   :  { %1020 = vmatmul.mubr.bf16.vlgmr.msra.gmra.mrb[4].mxu1 %v547_v27 }
 0x1b2   :  { %1030 = vmatprep.mubr.msk.f32.mxu1 %vm1356_vm0, %v1355_v1  ;;  %v893_v1 = vld [vmem:[%s1673_s10] ss:$0 sm:$0xff]  ;;  %s842_s10 = sshll.u32 %s1357_s6, 4  ;;  %s843_s10 = int_to_ptr.vmem [resolvable:$true] %s842_s10 }
 0x1b3   :  { %s1240_s2 = scalar_lea.vmem %s843_s10, 128  ;;  %p1245_p10 = scmp.lt.s32.totalorder %s843_s10, %s843_s10 }
 0x1b4   :  { %p1241_p9 = scmp.ne.s32.totalorder %s843_s10, %s1240_s2  ;;  %p1246_p11 = scmp.lt.s32.totalorder %s1240_s2, %s1240_s2 }
 0x1b6   :  { %p1247_p12 = por %p1246_p11, %p1245_p10 }
 0x1b8   :  { %p1248_p13 = pnand %p1247_p12, %p1241_p9 }
 0x264   :  { %v378_v28 = vpop.f32.mrb[0].mxu1 }
 0x265   :  { %v981_v29 = vpop.f32.mrb[1].mxu1  ;;  %v379_v34 = vadd.f32 %v875_v30, %v378_v28 }
 0x266   :  { %v381_v31 = vpop.f32.mrb[2].mxu1 }
 0x267   :  { %v382_v32 = vadd.f32 %v875_v30, %v381_v31  ;;  %v982_v33 = vpop.f32.mrb[3].mxu1  ;;  %v385_v36 = vmul.f32 %v379_v34, %v379_v34 }
 0x269   :  { %v386_v35 = vmul.f32 %v382_v32, %v382_v32 }
 0x26b   :  { %389 = vadd.xlane.f32.xlu1 %v386_v35 }
 0x26f   :  { %387 = vadd.xlane.f32.xlu1 %v385_v36 }
 0x284   :  { %v636_v37 = vpop.f32.mrb[4].mxu1 }
 0x285   :  { %v1021_v38 = vpop.f32.mrb[5].mxu1  ;;  %v637_v42 = vadd.f32 %v893_v1, %v636_v37 }
 0x286   :  { %v639_v39 = vpop.f32.mrb[6].mxu1 }
 0x287   :  { %v640_v40 = vadd.f32 %v893_v1, %v639_v39  ;;  %v1022_v41 = vpop.f32.mrb[7].mxu1  ;;  %v643_v44 = vmul.f32 %v637_v42, %v637_v42 }
 0x289   :  { %v644_v43 = vmul.f32 %v640_v40, %v640_v40 }
 0x28b   :  { %647 = vadd.xlane.f32.xlu0 %v644_v43 }
 0x28f   :  { %645 = vadd.xlane.f32.xlu0 %v643_v44 }
 0x2f8   :  { %v390_v45 = vpop.xlane.xlu1 %389 }
 0x2f9   :  { %v392_v50 = vmax.f32 %v390_v45, 1e-24 }
 0x2fc   :  { %v388_v46 = vpop.xlane.xlu1 %387 }
 0x2fd   :  { %v391_v47 = vmax.f32 %v388_v46, 1e-24 }
 0x2ff   :  { %1090 = vrsqrt.f32 %v391_v47 }
 0x309   :  { %v1091_v48 = vpop.eup %1090 }
 0x30a   :  { %v395_v49 = vmul.f32 %v1091_v48, %v379_v34 }
 0x30c   :  { %804 = vst [vmem:[#allocation18] sm:$0xff] %v395_v49 }
 0x318   :  { %v648_v51 = vpop.xlane.xlu0 %647 }
 0x319   :  { %v650_v52 = vmax.f32 %v648_v51, 1e-24 }
 0x31b   :  { %1092 = vrsqrt.f32 %v650_v52 }
 0x31c   :  { %1094 = vrsqrt.f32 %v392_v50  ;;  %v646_v53 = vpop.xlane.xlu0 %645 }
 0x31d   :  { %v649_v54 = vmax.f32 %v646_v53, 1e-24 }
 0x31f   :  { %1096 = vrsqrt.f32 %v649_v54 }
 0x325   :  { %v1093_v55 = vpop.eup %1092 }
 0x326   :  { %v1095_v56 = vpop.eup %1094  ;;  %v654_v57 = vmul.f32 %v1093_v55, %v640_v40 }
 0x327   :  { %v396_v59 = vmul.f32 %v1095_v56, %v382_v32 }
 0x328   :  { %1029 = vmatpush3.xpose.msra.mxu1 %v654_v57 }
 0x329   :  { %v1097_v58 = vpop.eup %1096 }
 0x32a   :  { %v653_v60 = vmul.f32 %v1097_v58, %v637_v42 }
 0x32b   :  { %1031 = vmatmul.mubr.f32.vlgmr.msra.gmra.mrb[8].mxu1 %v396_v59 }
 0x32c   :  { %1024 = vmatpush3.xpose.msra.mxu0 %v653_v60  ;;  %805 = vst [vmem:[#allocation19] sm:$0xff] %v653_v60 }
 0x32f   :  { %1026 = vmatmul.mubr.f32.vlgmr.msra.gmra.mrb[8].mxu0 %v395_v49 }
 0x330   :  { %1251 = shalt.err (!%p1248_p13)
}
 0x331   :  { %s1252_s5 = scalar_lea.hbm %s1677_s14, 128 }
 0x332   :  { %p1253_p0 = scmp.ne.s32.totalorder %s1677_s14, %s1252_s5  ;;  %p1256_p1 = scmp.lt.u32.totalorder %s1252_s5, %s1677_s14 }
 0x334   :  { %p1258_p2 = pnand %p1256_p1, %p1253_p0 }
 0x336   :  { %1261 = shalt.err (!%p1258_p2)
}
 0x337   :  { %845 = dma.vmem_to_hbm [thread:$0]  %s843_s10, 128, %s1677_s14, [#allocation20]   ;;  %vm801_vm1 = vcmask 64512  }
 0x338   :  { %s902_s23 = sld [smem:[#allocation2 + $0x1]]  ;;  %s1608_s24 = sld [smem:[#allocation2]] }
 0x339   :  { %s1358_s28 = smov [#allocation16]   ;;  %s1359_s0 = smov [#allocation18]  }
 0x33a   :  { %s822_s29 = sshll.u32 %s1358_s28, 4  ;;  %s832_s7 = sshll.u32 %s1359_s0, 4  ;;  %s823_s29 = int_to_ptr.vmem [resolvable:$true] %s822_s29  ;;  %s1611_s7 = int_to_ptr.vmem [resolvable:$true] %s832_s7 }
 0x33b   :  { %s1360_s16 = smov [#allocation15]   ;;  %s1262_s14 = scalar_lea.vmem %s823_s29, 128 }
 0x33c   :  { %s812_s9 = sshll.u32 %s1360_s16, 4  ;;  %p1263_p3 = scmp.ne.s32.totalorder %s823_s29, %s1262_s14  ;;  %s1614_s9 = int_to_ptr.vmem [resolvable:$true] %s812_s9 }
 0x33d   :  { %p1267_p4 = scmp.lt.s32.totalorder %s823_s29, %s823_s29  ;;  %p1268_p5 = scmp.lt.s32.totalorder %s1262_s14, %s1262_s14 }
 0x33e   :  { %v799_v61 = vstv %s902_s23  ;;  %v727_v2 = vstv %s1608_s24 }
 0x33f   :  { %p1269_p6 = por %p1268_p5, %p1267_p4 }
 0x341   :  { %p1270_p7 = pnand %p1269_p6, %p1263_p3 }
 0x3fe   :  { %v795_v62 = vpop.f32.mrb[8].mxu1 }
 0x3ff   :  { %v800_v63 = vmul.f32 %v799_v61, %v795_v62  ;;  %v1032_v0 = vpop.f32.mrb[9].mxu1 }
 0x401   :  { %803 = vst.msk [vmem:[#allocation16] sm:$0xff] %vm801_vm1, %v800_v63 }
 0x402   :  { %v723_v3 = vpop.f32.mrb[8].mxu0 }
 0x403   :  { %1273 = shalt.err (!%p1270_p7)
}
 0x404   :  { %s1274_s1 = scalar_lea.hbm %s1675_s12, 128 }
 0x405   :  { %p1275_p8 = scmp.ne.s32.totalorder %s1675_s12, %s1274_s1  ;;  %p1278_p9 = scmp.lt.u32.totalorder %s1274_s1, %s1675_s12 }
 0x407   :  { %p1280_p10 = pnand %p1278_p9, %p1275_p8 }
 0x409   :  { %1283 = shalt.err (!%p1280_p10)
}
 0x40a   :  { %825 = dma.vmem_to_hbm [thread:$0]  %s823_s29, 128, %s1675_s12, [#allocation17]   ;;  %v728_v4 = vmul.f32 %v727_v2, %v723_v3  ;;  %v1027_v5 = vpop.f32.mrb[9].mxu0 }
 0x40b   :  { %s1284_s2 = scalar_lea.vmem %s1611_s7, 128  ;;  %p1289_p12 = scmp.lt.s32.totalorder %s1611_s7, %s1611_s7 }
 0x40c   :  { %p1285_p11 = scmp.ne.s32.totalorder %s1611_s7, %s1284_s2  ;;  %p1290_p13 = scmp.lt.s32.totalorder %s1284_s2, %s1284_s2 }
 0x40e   :  { %p1291_p0 = por %p1290_p13, %p1289_p12 }
 0x410   :  { %p1292_p1 = pnand %p1291_p0, %p1285_p11 }
 0x412   :  { %1295 = shalt.err (!%p1292_p1)
}
 0x413   :  { %s1296_s5 = scalar_lea.hbm %s1676_s13, 128 }
 0x414   :  { %p1297_p2 = scmp.ne.s32.totalorder %s1676_s13, %s1296_s5  ;;  %p1300_p3 = scmp.lt.u32.totalorder %s1296_s5, %s1676_s13 }
 0x416   :  { %p1302_p4 = pnand %p1300_p3, %p1297_p2 }
 0x418   :  { %1305 = shalt.err (!%p1302_p4)
}
 0x419   :  { %835 = dma.vmem_to_hbm [thread:$0]  %s1611_s7, 128, %s1676_s13, [#allocation17]   ;;  %802 = vst.msk [vmem:[#allocation15] sm:$0xff] %vm801_vm1, %v728_v4 }
 0x41a   :  { %s1306_s15 = scalar_lea.vmem %s1614_s9, 128  ;;  %p1311_p6 = scmp.lt.s32.totalorder %s1614_s9, %s1614_s9 }
 0x41b   :  { %p1307_p5 = scmp.ne.s32.totalorder %s1614_s9, %s1306_s15  ;;  %p1312_p7 = scmp.lt.s32.totalorder %s1306_s15, %s1306_s15 }
 0x41d   :  { %p1313_p8 = por %p1312_p7, %p1311_p6 }
 0x41f   :  { %p1314_p9 = pnand %p1313_p8, %p1307_p5 }
 0x421   :  { %1317 = shalt.err (!%p1314_p9)
}
 0x422   :  { %s1318_s28 = scalar_lea.hbm %s1674_s11, 128 }
 0x423   :  { %p1319_p10 = scmp.ne.s32.totalorder %s1674_s11, %s1318_s28  ;;  %p1322_p11 = scmp.lt.u32.totalorder %s1318_s28, %s1674_s11 }
 0x425   :  { %p1324_p12 = pnand %p1322_p11, %p1319_p10 }
 0x427   :  { %1327 = shalt.err (!%p1324_p12)
}
 0x428   :  { %815 = dma.vmem_to_hbm [thread:$0]  %s1614_s9, 128, %s1674_s11, [#allocation4]  }
 0x429   :  { %1338 = dma.done.wait [#allocation4], 128  }
 0x42a   :  { %1339 = vsyncadd [#allocation4], 4294967168 }
 0x42b   :  { %1340 = dma.done.wait [#allocation17], 256  }
 0x42c   :  { %1341 = vsyncadd [#allocation17], 4294967040 }
 0x42d   :  { %1342 = dma.done.wait [#allocation20], 128  }
 0x42e   :  { %1343 = vsyncadd [#allocation20], 4294967168 }
 0x42f   :  { %858 = vsyncpa [#allocation3], 1 }
 0x430   :  { %859 = vsyncpa [#allocation8], 1 }
 0x431   :  { %860 = vsyncpa [#allocation11], 1 }
 0x432   :  { %861 = vsyncpa [#allocation14], 1 }
 0x433   :  { %862 = vsyncpa [#allocation4], 1 }
 0x434   :  { %863 = vsyncpa [#allocation17], 1 }
 0x435   :  { %864 = vsyncpa [#allocation20], 1 }
 0x436   :  { %865 = vsyncpa [#allocation5], 1 }

</bundles_post_ra>
